<compile_context>
chip_gen: v7x
topology: tpu7x:2x2x1
jax: 0.10.0
libtpu: 0.0.40
codegen_flags: <defaults>
</compile_context>

<pallas_src>
import functools

import jax
import jax.numpy as jnp
from jax.experimental import pallas as pl
from jax.experimental.pallas import tpu as pltpu


def _round_up(v, m):
    return ((v + m - 1) // m) * m


def _elu(y):
    # ELU(alpha=1): y if y > 0 else exp(y) - 1   (exp only -> guaranteed EUP lowering)
    return jnp.where(y > 0.0, y, jnp.exp(jnp.minimum(y, 0.0)) - 1.0)


def _degree_decoder_kernel(x_ref, w1_ref, b1_ref, w2t_ref, b2_ref, out_ref):
    x = x_ref[...]                                        # (TM, IN_C) f32

    # Layer 1: Linear -> Dropout(eval: identity) -> ELU
    h = jnp.dot(x, w1_ref[...],
                preferred_element_type=jnp.float32,
                precision=jax.lax.Precision.HIGHEST) + b1_ref[...]
    h = _elu(h)                                           # (TM, HID_P)

    # Layer 2 computed transposed: (out_c, tm) = w2^T @ h^T, via native trans_b
    # contraction ('oh,th->ot'), so the row axis lands on lanes -> lane-dense store.
    y = jax.lax.dot_general(
        w2t_ref[...], h,
        dimension_numbers=(((1,), (1,)), ((), ())),
        preferred_element_type=jnp.float32,
        precision=jax.lax.Precision.HIGHEST) + b2_ref[...]   # (OUT_C, TM)
    out_ref[...] = _elu(y)


def _pick_tiles(n, tm_max):
    """Pick (row_tile, padded_rows).

    Constraints: tile divides padded_rows; tile is sublane-legal for x (mult of 8)
    and lane-legal for the transposed output (mult of 128 OR == padded_rows).
    Keep >=2 grid steps when there is enough work (v7x has 2 TensorCores).
    """
    if n <= 256:
        tm = _round_up(max(n, 8), 8)      # single full-extent tile (lane-legal: == full dim)
        return tm, tm
    tm = min(_round_up(tm_max, 128), _round_up(n, 128))
    if _round_up(n, tm) // tm < 2:        # guarantee >=2 steps so the 2nd TC gets work
        tm = max(128, _round_up((n + 1) // 2, 128))
    return tm, _round_up(n, tm)


@functools.partial(jax.jit, static_argnames=("tm",))
def degree_decoder_forward(x, w1, b1, w2, b2, *, tm=1024):
    """Fused forward pass of DegreeDecoder (eval mode).

    x  : (N, in_channels)
    w1 : (in_channels, hidden_channels), b1: (hidden_channels,)
    w2 : (hidden_channels, out_channels), b2: (out_channels,)
    Returns (N, out_channels) float32.
    """
    n, in_c = x.shape
    hid_c = w1.shape[1]
    out_c = w2.shape[1]

    hid_p = _round_up(hid_c, 128)         # hidden stays lane-dense; weights are tiny/resident
    tm_eff, n_p = _pick_tiles(n, tm)

    xf = x.astype(jnp.float32)
    x_in = xf if n_p == n else jnp.pad(xf, ((0, n_p - n), (0, 0)))

    # Zero-padded hidden lanes are exact: padded W1 cols/bias -> h=0, ELU(0)=0,
    # and padded W2^T cols are zero so they contribute nothing to layer 2.
    w1_p = jnp.pad(w1.astype(jnp.float32), ((0, 0), (0, hid_p - hid_c)))
    b1_p = jnp.pad(b1.astype(jnp.float32), (0, hid_p - hid_c)).reshape(1, hid_p)
    w2t_p = jnp.pad(w2.astype(jnp.float32), ((0, hid_p - hid_c), (0, 0))).T  # (out_c, hid_p)
    b2_p = b2.astype(jnp.float32).reshape(out_c, 1)

    grid = (n_p // tm_eff,)

    out_t = pl.pallas_call(
        _degree_decoder_kernel,
        out_shape=jax.ShapeDtypeStruct((out_c, n_p), jnp.float32),
        grid=grid,
        in_specs=[
            pl.BlockSpec((tm_eff, in_c), lambda i: (i, 0)),   # x row tile (unpadded features)
            pl.BlockSpec((in_c, hid_p), lambda i: (0, 0)),    # W1 (resident)
            pl.BlockSpec((1, hid_p), lambda i: (0, 0)),       # b1
            pl.BlockSpec((out_c, hid_p), lambda i: (0, 0)),   # W2^T (resident)
            pl.BlockSpec((out_c, 1), lambda i: (0, 0)),       # b2
        ],
        out_specs=pl.BlockSpec((out_c, tm_eff), lambda i: (0, i)),  # lane-dense narrow output
        compiler_params=pltpu.CompilerParams(
            # Row tiles are independent -> shard across TensorCores on v7x;
            # measured no-op on single-TC v5e/v6e.
            dimension_semantics=("parallel",),
            # Explicit limit: above v5e's 16 MiB scoped default, below v7x's 64 MiB physical.
            vmem_limit_bytes=32 * 1024 * 1024,
        ),
    )(x_in, w1_p, b1_p, w2t_p, b2_p)

    # (out_c, n_p) -> (n, out_c); tiny transpose (out_c is small, typically 1).
    return out_t[:, :n].T


def init_params(key, in_channels, hidden_channels, out_channels=1):
    """Mirror PyTorch nn.Linear default init (uniform +/- 1/sqrt(fan_in))."""
    ks = jax.random.split(key, 4)

    def linear(kw, kb, fan_in, fan_out):
        bound = 1.0 / jnp.sqrt(jnp.float32(fan_in))
        w = jax.random.uniform(kw, (fan_in, fan_out), jnp.float32, -bound, bound)
        b = jax.random.uniform(kb, (fan_out,), jnp.float32, -bound, bound)
        return w, b

    w1, b1 = linear(ks[0], ks[1], in_channels, hidden_channels)
    w2, b2 = linear(ks[2], ks[3], hidden_channels, out_channels)
    return dict(w1=w1, b1=b1, w2=w2, b2=b2)


def _reference_forward(x, w1, b1, w2, b2):
    # Pure-JAX reference of DegreeDecoder.forward (eval mode: dropout = identity).
    hp = jax.lax.Precision.HIGHEST
    h = jax.nn.elu(jnp.dot(x, w1, precision=hp) + b1)
    return jax.nn.elu(jnp.dot(h, w2, precision=hp) + b2)


if __name__ == "__main__":
    key = jax.random.PRNGKey(0)
    k_x, k_p = jax.random.split(key, 2)

    # Small shapes consistent with the module: N rows of node embeddings.
    N, IN_C, HID_C, OUT_C = 64, 16, 32, 1

    x = jax.random.normal(k_x, (N, IN_C), jnp.float32)
    params = init_params(k_p, IN_C, HID_C, OUT_C)

    out = degree_decoder_forward(x, params["w1"], params["b1"],
                                 params["w2"], params["b2"])
    out = jax.block_until_ready(out)

    ref = _reference_forward(x, params["w1"], params["b1"],
                             params["w2"], params["b2"])

    assert out.shape == (N, OUT_C)
    assert bool(jnp.all(jnp.isfinite(out)))
    assert bool(jnp.allclose(out, ref, atol=1e-5, rtol=1e-4))
    print("KERNEL_OK")
</pallas_src>

<mosaic_0001>
module attributes {stable_mosaic.version = 11 : i64} {
  func.func @_degree_decoder_kernel(%arg0: i32, %arg1: memref<64x16xf32, #tpu.memory_space<vmem>>, %arg2: memref<16x128xf32, #tpu.memory_space<vmem>>, %arg3: memref<1x128xf32, #tpu.memory_space<vmem>>, %arg4: memref<1x128xf32, #tpu.memory_space<vmem>>, %arg5: memref<1x1xf32, #tpu.memory_space<vmem>>, %arg6: memref<1x64xf32, #tpu.memory_space<vmem>>) attributes {dimension_semantics = [#tpu.dimension_semantics<parallel>], iteration_bounds = array<i64: 1>, scalar_prefetch = 0 : i64, scratch_operands = 0 : i64, tpu.core_type = #tpu.core_type<tc>, window_params = [{transform_indices = @transform_0, window_bounds = array<i64: 64, 16>}, {pipeline_mode = #tpu.pipeline_mode<synchronous>, transform_indices = @transform_1, window_bounds = array<i64: 16, 128>}, {pipeline_mode = #tpu.pipeline_mode<synchronous>, transform_indices = @transform_2, window_bounds = array<i64: 1, 128>}, {pipeline_mode = #tpu.pipeline_mode<synchronous>, transform_indices = @transform_3, window_bounds = array<i64: 1, 128>}, {pipeline_mode = #tpu.pipeline_mode<synchronous>, transform_indices = @transform_4, window_bounds = array<i64: 1, 1>}, {transform_indices = @transform_5, window_bounds = array<i64: 1, 64>}]} {
    %c0 = arith.constant 0 : index
    %c0_0 = arith.constant 0 : index
    %0 = vector.load %arg1[%c0, %c0_0] : memref<64x16xf32, #tpu.memory_space<vmem>>, vector<64x16xf32>
    %c0_1 = arith.constant 0 : index
    %c0_2 = arith.constant 0 : index
    %1 = vector.load %arg2[%c0_1, %c0_2] : memref<16x128xf32, #tpu.memory_space<vmem>>, vector<16x128xf32>
    %cst = arith.constant dense<0.000000e+00> : vector<64x128xf32>
    %2 = tpu.matmul %0, %1, %cst {dimension_numbers = #tpu.dot_dimension_numbers<[1], [0], [0], [1], [0, 0, 1, 1], [], []>, precision = #tpu.contract_precision<fp32>} : vector<64x16xf32>, vector<16x128xf32>, vector<64x128xf32> -> vector<64x128xf32>
    %c0_3 = arith.constant 0 : index
    %c0_4 = arith.constant 0 : index
    %3 = vector.load %arg3[%c0_3, %c0_4] : memref<1x128xf32, #tpu.memory_space<vmem>>, vector<1x128xf32>
    %4 = vector.broadcast %3 : vector<1x128xf32> to vector<64x128xf32>
    %5 = arith.addf %2, %4 : vector<64x128xf32>
    %cst_5 = arith.constant 0.000000e+00 : f32
    %6 = vector.broadcast %cst_5 : f32 to vector<64x128xf32>
    %7 = arith.cmpf ogt, %5, %6 : vector<64x128xf32>
    %cst_6 = arith.constant 0.000000e+00 : f32
    %8 = vector.broadcast %cst_6 : f32 to vector<64x128xf32>
    %9 = arith.minimumf %5, %8 : vector<64x128xf32>
    %10 = math.exp %9 : vector<64x128xf32>
    %cst_7 = arith.constant 1.000000e+00 : f32
    %11 = vector.broadcast %cst_7 : f32 to vector<64x128xf32>
    %12 = arith.subf %10, %11 : vector<64x128xf32>
    %13 = arith.select %7, %5, %12 : vector<64x128xi1>, vector<64x128xf32>
    %c0_8 = arith.constant 0 : index
    %c0_9 = arith.constant 0 : index
    %14 = vector.load %arg4[%c0_8, %c0_9] : memref<1x128xf32, #tpu.memory_space<vmem>>, vector<1x128xf32>
    %cst_10 = arith.constant dense<0.000000e+00> : vector<1x64xf32>
    %15 = tpu.matmul %14, %13, %cst_10 {dimension_numbers = #tpu.dot_dimension_numbers<[1], [1], [0], [0], [0, 0, 1, 0], [], []>, precision = #tpu.contract_precision<fp32>} : vector<1x128xf32>, vector<64x128xf32>, vector<1x64xf32> -> vector<1x64xf32>
    %c0_11 = arith.constant 0 : index
    %c0_12 = arith.constant 0 : index
    %16 = vector.load %arg5[%c0_11, %c0_12] : memref<1x1xf32, #tpu.memory_space<vmem>>, vector<1x1xf32>
    %17 = vector.broadcast %16 : vector<1x1xf32> to vector<1x64xf32>
    %18 = arith.addf %15, %17 : vector<1x64xf32>
    %cst_13 = arith.constant 0.000000e+00 : f32
    %19 = vector.broadcast %cst_13 : f32 to vector<1x64xf32>
    %20 = arith.cmpf ogt, %18, %19 : vector<1x64xf32>
    %cst_14 = arith.constant 0.000000e+00 : f32
    %21 = vector.broadcast %cst_14 : f32 to vector<1x64xf32>
    %22 = arith.minimumf %18, %21 : vector<1x64xf32>
    %23 = math.exp %22 : vector<1x64xf32>
    %cst_15 = arith.constant 1.000000e+00 : f32
    %24 = vector.broadcast %cst_15 : f32 to vector<1x64xf32>
    %25 = arith.subf %23, %24 : vector<1x64xf32>
    %26 = arith.select %20, %18, %25 : vector<1x64xi1>, vector<1x64xf32>
    %c0_16 = arith.constant 0 : index
    %c0_17 = arith.constant 0 : index
    %27 = vector.load %arg6[%c0_16, %c0_17] : memref<1x64xf32, #tpu.memory_space<vmem>>, vector<1x64xf32>
    tpu.vector_store %arg6[%c0_16, %c0_17], %26 {strides = array<i32>} : memref<1x64xf32, #tpu.memory_space<vmem>>, vector<1x64xf32>,
    return
  }
  func.func @transform_0(%arg0: i32) -> (i32, i32) {
    %c0_i32 = arith.constant 0 : i32
    %c0_i32_0 = arith.constant 0 : i32
    return %arg0, %c0_i32 : i32, i32
  }
  func.func @transform_1(%arg0: i32) -> (i32, i32) {
    %c0_i32 = arith.constant 0 : i32
    %c0_i32_0 = arith.constant 0 : i32
    %c0_i32_1 = arith.constant 0 : i32
    return %c0_i32, %c0_i32_0 : i32, i32
  }
  func.func @transform_2(%arg0: i32) -> (i32, i32) {
    %c0_i32 = arith.constant 0 : i32
    %c0_i32_0 = arith.constant 0 : i32
    %c0_i32_1 = arith.constant 0 : i32
    return %c0_i32, %c0_i32_0 : i32, i32
  }
  func.func @transform_3(%arg0: i32) -> (i32, i32) {
    %c0_i32 = arith.constant 0 : i32
    %c0_i32_0 = arith.constant 0 : i32
    %c0_i32_1 = arith.constant 0 : i32
    return %c0_i32, %c0_i32_0 : i32, i32
  }
  func.func @transform_4(%arg0: i32) -> (i32, i32) {
    %c0_i32 = arith.constant 0 : i32
    %c0_i32_0 = arith.constant 0 : i32
    %c0_i32_1 = arith.constant 0 : i32
    return %c0_i32, %c0_i32_0 : i32, i32
  }
  func.func @transform_5(%arg0: i32) -> (i32, i32) {
    %c0_i32 = arith.constant 0 : i32
    %c0_i32_0 = arith.constant 0 : i32
    return %c0_i32, %arg0 : i32, i32
  }
}

</mosaic_0001>

<bundles_post_ra>
// kernel: degree_decoder_forward.1
= control target key start
LH: loop header
LB: loop body
LE: loop exit
PB: predicated region body
PF: predicated region fallthrough
CT: control target
= control target key end

     0   :  { %s2271_s0 = inlined_call_operand.vmem [shape: f32[64,16], index: 0, kind: input, shape index: {}]   ;;  %s2272_s1 = inlined_call_operand.vmem [shape: f32[16,128], index: 1, kind: input, shape index: {}]   ;;  %s2273_s2 = inlined_call_operand.vmem [shape: f32[1,128], index: 2, kind: input, shape index: {}]   ;;  %s2274_s3 = inlined_call_operand.vmem [shape: f32[1,128], index: 3, kind: input, shape index: {}]   ;;  %s2275_s4 = inlined_call_operand.<no memory space> [shape: f32[1,1], index: 4, kind: input, shape index: {}]   ;;  %s2276_s5 = inlined_call_operand.hbm [shape: f32[1,64], index: 5, kind: output, shape index: {}]  }
   0x1   :  { %v10_v0 = vstv %s2275_s4 }
   0x2   :  { %11 = vst [vmem:[#allocation2] sm:$0x1] %v10_v0 }
   0x3   :  { %v31_v1 = vld [vmem:[%s2272_s1] sm:$0xff]  ;;  %v32_v2 = vld [vmem:[%s2272_s1 + $0x8] sm:$0xff]  ;;  %vm40_vm0 = vcmask 130048   ;;  %v25_v8 = vld [vmem:[%s2271_s0 + $0x10] sm:$0xff] }
   0x4   :  { %v23_v3 = vld [vmem:[%s2271_s0] sm:$0xff]  ;;  %v66_v4 = vand.u32 4294901760, %v31_v1  ;;  %v69_v5 = vand.u32 4294901760, %v32_v2  ;;  %v24_v7 = vld [vmem:[%s2271_s0 + $0x8] sm:$0xff]  ;;  %v26_v9 = vld [vmem:[%s2271_s0 + $0x18] sm:$0xff]  ;;  %v48_v16 = vsel %vm40_vm0, %v25_v8, 0 }
   0x5   :  { %v42_v6 = vsel %vm40_vm0, %v23_v3, 0  ;;  %v45_v11 = vsel %vm40_vm0, %v24_v7, 0  ;;  %v27_v12 = vld [vmem:[%s2271_s0 + $0x20] sm:$0xff] }
   0x6   :  { %v2036_v10 = vand.u32 4294901760, %v42_v6  ;;  %v2042_v13 = vpack.c.bf16 %v69_v5, %v66_v4  ;;  %v2044_v14 = vsub.f32 %v31_v1, %v66_v4  ;;  %v2046_v15 = vsub.f32 %v32_v2, %v69_v5 }
   0x7   :  { %12 = vsyncpa [#allocation4], 0  ;;  %v51_v17 = vsel %vm40_vm0, %v26_v9, 0  ;;  %v28_v18 = vld [vmem:[%s2271_s0 + $0x28] sm:$0xff]  ;;  %v54_v21 = vsel %vm40_vm0, %v27_v12, 0  ;;  %v29_v22 = vld [vmem:[%s2271_s0 + $0x30] sm:$0xff] }
   0x8   :  { %1587 = vmatprep.mubr.f32.mxu0 %v2036_v10  ;;  %v215_v19 = vand.u32 4294901760, %v2044_v14  ;;  %v222_v20 = vand.u32 4294901760, %v2046_v15  ;;  %1778 = vmatprep.subr.bf16.mxu1 %v2042_v13  ;;  %v2061_v23 = vand.u32 4294901760, %v45_v11  ;;  %v2063_v24 = vand.u32 4294901760, %v48_v16  ;;  %v30_v35 = vld [vmem:[%s2271_s0 + $0x38] sm:$0xff] }
   0x9   :  { %1780 = vmatpush3.bf16.msra.mxu1 %v2042_v13  ;;  %v2072_v27 = vand.u32 4294901760, %v51_v17  ;;  %v57_v28 = vsel %vm40_vm0, %v28_v18, 0  ;;  %v2078_v30 = vand.u32 4294901760, %v54_v21  ;;  %v60_v31 = vsel %vm40_vm0, %v29_v22, 0 }
   0xa   :  { %v216_v25 = vsub.f32 %v2044_v14, %v215_v19  ;;  %v223_v26 = vsub.f32 %v2046_v15, %v222_v20  ;;  %v2076_v29 = vsub.f32 %v45_v11, %v2061_v23  ;;  %v2082_v32 = vsub.f32 %v42_v6, %v2036_v10 }
   0xb   :  { %v2088_v36 = vsub.f32 %v48_v16, %v2063_v24  ;;  %v2091_v37 = vsub.f32 %v51_v17, %v2072_v27  ;;  %v1785_v38 = vpack.c.bf16 %v2046_v15, %v2044_v14  ;;  %v2095_v39 = vand.u32 4294901760, %v57_v28 }
   0xc   :  { %v217_v33 = vand.u32 4294901760, %v216_v25  ;;  %v224_v34 = vand.u32 4294901760, %v223_v26  ;;  %v2098_v40 = vsub.f32 %v54_v21, %v2078_v30  ;;  %v134_v41 = vand.u32 4294901760, %v2082_v32 }
   0xd   :  { %v144_v43 = vand.u32 4294901760, %v2076_v29  ;;  %v154_v44 = vand.u32 4294901760, %v2088_v36  ;;  %v164_v45 = vand.u32 4294901760, %v2091_v37  ;;  %v2104_v46 = vand.u32 4294901760, %v60_v31 }
   0xe   :  { %v1781_v42 = vpack.c.bf16 %v224_v34, %v217_v33  ;;  %v63_v47 = vsel %vm40_vm0, %v30_v35, 0  ;;  %v174_v48 = vand.u32 4294901760, %v2098_v40  ;;  %v135_v49 = vsub.f32 %v2082_v32, %v134_v41 }
   0xf   :  { %v183_v50 = vsub.f32 %v57_v28, %v2095_v39  ;;  %v145_v51 = vsub.f32 %v2076_v29, %v144_v43  ;;  %v155_v52 = vsub.f32 %v2088_v36, %v154_v44  ;;  %v165_v53 = vsub.f32 %v2091_v37, %v164_v45 }
  0x10   :  { %1782 = vmatprep.subr.bf16.mxu0 %v1781_v42  ;;  %v193_v54 = vsub.f32 %v60_v31, %v2104_v46  ;;  %v136_v55 = vand.u32 4294901760, %v135_v49  ;;  %v175_v56 = vsub.f32 %v2098_v40, %v174_v48  ;;  %v2115_v57 = vand.u32 4294901760, %v63_v47 }
  0x11   :  { %1784 = vmatpush3.bf16.msra.mxu0 %v1781_v42  ;;  %v184_v58 = vand.u32 4294901760, %v183_v50  ;;  %v146_v59 = vand.u32 4294901760, %v145_v51  ;;  %v156_v60 = vand.u32 4294901760, %v155_v52  ;;  %v166_v63 = vand.u32 4294901760, %v165_v53 }
  0x12   :  { %1786 = vmatprep.subr.bf16.mxu0 %v1785_v38  ;;  %v194_v61 = vand.u32 4294901760, %v193_v54  ;;  %1571 = vmatprep.mubr.f32.mxu1 %v136_v55  ;;  %v203_v62 = vsub.f32 %v63_v47, %v2115_v57  ;;  %v176_v1 = vand.u32 4294901760, %v175_v56  ;;  %v1793_v8 = vpack.c.bf16 %v222_v20, %v215_v19  ;;  %v1443_v19 = vld [vmem:[%s2273_s2] ss:$0 sm:$0xff] }
  0x13   :  { %1572 = vmatmul.mubr.f32.vlgmr.msra.gmra.mrb[0].mxu1 %v146_v59  ;;  %v185_v0 = vsub.f32 %v183_v50, %v184_v58  ;;  %v1979_v9 = vmov 0.0|0.0   ;;  %vm1980_vm1 = vmmov 0   ;;  %vm1427_vm10 = vcmask 516096  }
  0x14   :  { %1588 = vmatmul.mubr.f32.vlgmr.msra.gmra.mrb[0].mxu0 %v2061_v23  ;;  %v195_v2 = vsub.f32 %v193_v54, %v194_v61  ;;  %v204_v3 = vand.u32 4294901760, %v203_v62  ;;  %1574 = vmatprep.mubr.f32.mxu1 %v156_v60 }
  0x15   :  { %1788 = vmatpush3.bf16.msra.mxu0 %v1785_v38  ;;  %1590 = vmatprep.mubr.f32.mxu0 %v2063_v24  ;;  %v186_v4 = vand.u32 4294901760, %v185_v0 }
  0x16   :  { %1790 = vmatprep.subr.bf16.mxu0 %v2042_v13  ;;  %v205_v5 = vsub.f32 %v203_v62, %v204_v3  ;;  %v196_v6 = vand.u32 4294901760, %v195_v2  ;;  %1825 = vmatprep.subr.bf16.mxu1 %v1979_v9 }
  0x17   :  { %1575 = vmatmul.mubr.f32.gmra.mrb[2].mxu1 %v166_v63  ;;  %v2178_v63 = vld [vmem:[%s2274_s3] sm:$0x1]  ;;  %s1983_s3 = smov [#allocation3]  }
  0x18   :  { %1591 = vmatmul.mubr.f32.gmra.mrb[2].mxu0 %v2072_v27  ;;  %1577 = vmatprep.mubr.f32.mxu1 %v176_v1  ;;  %v206_v7 = vand.u32 4294901760, %v205_v5  ;;  %v2181_v5 = vand.u32 4294901760, %v2178_v63  ;;  %s1435_s15 = sshll.u32 %s1983_s3, 4  ;;  %s1436_s15 = int_to_ptr.vmem [resolvable:$true] %s1435_s15 }
  0x19   :  { %1593 = vmatprep.mubr.f32.mxu0 %v2078_v30  ;;  %s1955_s16 = scalar_lea.vmem %s1436_s15, 16  ;;  %s1959_s17 = scalar_lea.vmem %s1436_s15, 32 }
  0x1a   :  { %p1956_p0 = scmp.ne.s32.totalorder %s1436_s15, %s1955_s16  ;;  %p1960_p1 = scmp.lt.s32.totalorder %s1436_s15, %s1436_s15 }
  0x1b   :  { %1578 = vmatmul.mubr.f32.gmra.mrb[4].mxu1 %v186_v4  ;;  %p1961_p2 = scmp.lt.s32.totalorder %s1959_s17, %s1955_s16 }
  0x1c   :  { %1594 = vmatmul.mubr.f32.gmra.mrb[4].mxu0 %v2095_v39  ;;  %1580 = vmatprep.mubr.f32.mxu1 %v196_v6 }
  0x1d   :  { %1596 = vmatprep.mubr.f32.mxu0 %v2104_v46  ;;  %p1962_p3 = por %p1961_p2, %p1960_p1 }
  0x1f   :  { %1581 = vmatmul.mubr.f32.gmra.mrb[6].mxu1 %v206_v7  ;;  %p1963_p4 = pnand %p1962_p3, %p1956_p0 }
  0x20   :  { %1597 = vmatmul.mubr.f32.gmra.mrb[6].mxu0 %v2115_v57 }
  0x21   :  { %1603 = vmatprep.mubr.f32.mxu0 %v2082_v32 }
  0x24   :  { %1604 = vmatmul.mubr.f32.vlgmr.msra.gmra.mrb[0].mxu0 %v2076_v29 }
  0x25   :  { %1792 = vmatpush3.bf16.msra.mxu0 %v2042_v13  ;;  %1606 = vmatprep.mubr.f32.mxu0 %v2088_v36 }
  0x26   :  { %1794 = vmatprep.subr.bf16.mxu0 %v1793_v8 }
  0x28   :  { %1607 = vmatmul.mubr.f32.gmra.mrb[2].mxu0 %v2091_v37 }
  0x29   :  { %1609 = vmatprep.mubr.f32.mxu0 %v2098_v40 }
  0x2c   :  { %1610 = vmatmul.mubr.f32.gmra.mrb[4].mxu0 %v183_v50 }
  0x2d   :  { %1612 = vmatprep.mubr.f32.mxu0 %v193_v54 }
  0x30   :  { %1613 = vmatmul.mubr.f32.gmra.mrb[6].mxu0 %v203_v62 }
  0x31   :  { %1619 = vmatprep.mubr.f32.mxu0 %v134_v41 }
  0x34   :  { %1620 = vmatmul.mubr.f32.vlgmr.msra.gmra.mrb[0].mxu0 %v144_v43 }
  0x35   :  { %1796 = vmatpush3.bf16.msra.mxu0 %v1793_v8  ;;  %1622 = vmatprep.mubr.f32.mxu0 %v154_v44 }
  0x36   :  { %1798 = vmatprep.subr.bf16.mxu0 %v2042_v13 }
  0x38   :  { %1623 = vmatmul.mubr.f32.gmra.mrb[2].mxu0 %v164_v45 }
  0x39   :  { %1625 = vmatprep.mubr.f32.mxu0 %v174_v48 }
  0x3c   :  { %1626 = vmatmul.mubr.f32.gmra.mrb[4].mxu0 %v184_v58 }
  0x3d   :  { %1628 = vmatprep.mubr.f32.mxu0 %v194_v61 }
  0x40   :  { %1629 = vmatmul.mubr.f32.gmra.mrb[6].mxu0 %v204_v3 }
  0x41   :  { %1635 = vmatprep.mubr.f32.mxu0 %v2036_v10 }
  0x44   :  { %1636 = vmatmul.mubr.f32.vlgmr.msra.gmra.mrb[0].mxu0 %v2061_v23 }
  0x45   :  { %1800 = vmatpush3.bf16.msra.mxu0 %v2042_v13  ;;  %1638 = vmatprep.mubr.f32.mxu0 %v2063_v24 }
  0x46   :  { %1801 = vmatprep.subr.bf16.mxu0 %v1979_v9 }
  0x48   :  { %1639 = vmatmul.mubr.f32.gmra.mrb[2].mxu0 %v2072_v27 }
  0x49   :  { %1641 = vmatprep.mubr.f32.mxu0 %v2078_v30 }
  0x4c   :  { %1642 = vmatmul.mubr.f32.gmra.mrb[4].mxu0 %v2095_v39 }
  0x4d   :  { %1644 = vmatprep.mubr.f32.mxu0 %v2104_v46 }
  0x50   :  { %1645 = vmatmul.mubr.f32.gmra.mrb[6].mxu0 %v2115_v57 }
  0x51   :  { %1651 = vmatprep.mubr.f32.mxu0 %v2036_v10  ;;  %v1981_v10 = vmov 0.0  }
  0x52   :  { %1717 = vmatprep.mubr.msk.f32.mxu1 %vm1980_vm1, %v1981_v10 }
  0x54   :  { %1652 = vmatmul.mubr.f32.vlgmr.msra.gmra.mrb[0].mxu0 %v2061_v23 }
  0x55   :  { %1654 = vmatprep.mubr.f32.mxu0 %v2063_v24 }
  0x58   :  { %1655 = vmatmul.mubr.f32.gmra.mrb[2].mxu0 %v2072_v27 }
  0x59   :  { %1657 = vmatprep.mubr.f32.mxu0 %v2078_v30 }
  0x5c   :  { %1658 = vmatmul.mubr.f32.gmra.mrb[4].mxu0 %v2095_v39 }
  0x5d   :  { %1660 = vmatprep.mubr.f32.mxu0 %v2104_v46 }
  0x60   :  { %1661 = vmatmul.mubr.f32.gmra.mrb[6].mxu0 %v2115_v57 }
  0x61   :  { %1679 = vmatprep.mubr.msk.f32.mxu0 %vm1980_vm1, %v1981_v10 }
  0xe6   :  { %v1573_v11 = vpop.f32.mrb[0].mxu1 }
  0xe7   :  { %v138_v12 = vpop.f32.mrb[1].mxu1  ;;  %v149_v20 = vadd.f32 %v1573_v11, %v1443_v19 }
  0xe8   :  { %v139_v21 = vadd.f32 %v1443_v19, %v138_v12 }
  0xea   :  { %v1576_v13 = vpop.f32.mrb[2].mxu1 }
  0xeb   :  { %v158_v14 = vpop.f32.mrb[3].mxu1  ;;  %v169_v25 = vadd.f32 %v1576_v13, %v1443_v19 }
  0xec   :  { %v159_v27 = vadd.f32 %v1443_v19, %v158_v14 }
  0xee   :  { %v1579_v15 = vpop.f32.mrb[4].mxu1 }
  0xef   :  { %v178_v16 = vpop.f32.mrb[5].mxu1  ;;  %v189_v34 = vadd.f32 %v1579_v15, %v1443_v19 }
  0xf0   :  { %v179_v37 = vadd.f32 %v1443_v19, %v178_v16 }
  0xf2   :  { %v1582_v17 = vpop.f32.mrb[6].mxu1 }
  0xf3   :  { %v198_v18 = vpop.f32.mrb[7].mxu1  ;;  %v209_v44 = vadd.f32 %v1582_v17, %v1443_v19 }
  0xf4   :  { %v199_v47 = vadd.f32 %v1443_v19, %v198_v18 }
 0x127   :  { %v1653_v22 = vpop.f32.mrb[0].mxu0 }
 0x128   :  { %v1874_v23 = vadd.f32 %v1653_v22, %v149_v20  ;;  %v779_v24 = vpop.f32.mrb[1].mxu0 }
 0x129   :  { %v1876_v26 = vadd.f32 %v779_v24, %v139_v21 }
 0x12a   :  { %v834_v28 = vmin.f32 %v1874_v23, 0.0  ;;  %vm826_vm2 = vcmp.gt.f32.partialorder %v1874_v23, 0.0 }
 0x12b   :  { %v833_v29 = vmin.f32 %v1876_v26, 0.0  ;;  %v1656_v30 = vpop.f32.mrb[2].mxu0  ;;  %vm825_vm3 = vcmp.gt.f32.partialorder %v1876_v26, 0.0 }
 0x12c   :  { %v843_v31 = vmul.f32 1.442695, %v834_v28  ;;  %v1878_v32 = vadd.f32 %v1656_v30, %v169_v25  ;;  %v791_v33 = vpop.f32.mrb[3].mxu0  ;;  %v874_v28 = vld [vmem:[#allocation2] sm:$0x1] }
 0x12d   :  { %v841_v35 = vmul.f32 1.442695, %v833_v29  ;;  %v1880_v36 = vadd.f32 %v791_v33, %v159_v27 }
 0x12e   :  { %1937 = vpow2.f32 %v843_v31  ;;  %v836_v38 = vmin.f32 %v1878_v32, 0.0  ;;  %vm828_vm4 = vcmp.gt.f32.partialorder %v1878_v32, 0.0 }
 0x12f   :  { %1939 = vpow2.f32 %v841_v35  ;;  %v835_v39 = vmin.f32 %v1880_v36, 0.0  ;;  %v1659_v40 = vpop.f32.mrb[4].mxu0  ;;  %vm827_vm5 = vcmp.gt.f32.partialorder %v1880_v36, 0.0 }
 0x130   :  { %v847_v41 = vmul.f32 1.442695, %v836_v38  ;;  %v2163_v42 = vadd.f32 %v1659_v40, %v189_v34  ;;  %v803_v43 = vpop.f32.mrb[5].mxu0  ;;  %v1982_v38 = vmov 0  }
 0x131   :  { %v845_v45 = vmul.f32 1.442695, %v835_v39  ;;  %v2165_v46 = vadd.f32 %v803_v43, %v179_v37  ;;  %1936 = vset.pattern.permute.xlu0 %v1982_v38 }
 0x132   :  { %1941 = vpow2.f32 %v847_v41  ;;  %v838_v48 = vmin.f32 %v2163_v42, 0.0  ;;  %vm830_vm6 = vcmp.gt.f32.partialorder %v2163_v42, 0.0  ;;  %877 = vperm.xlu0 %1936, %v874_v28  }
 0x133   :  { %1943 = vpow2.f32 %v845_v45  ;;  %v837_v49 = vmin.f32 %v2165_v46, 0.0  ;;  %v1662_v50 = vpop.f32.mrb[6].mxu0  ;;  %vm829_vm7 = vcmp.gt.f32.partialorder %v2165_v46, 0.0 }
 0x134   :  { %v851_v51 = vmul.f32 1.442695, %v838_v48  ;;  %v2169_v52 = vadd.f32 %v1662_v50, %v209_v44  ;;  %v815_v53 = vpop.f32.mrb[7].mxu0 }
 0x135   :  { %v849_v54 = vmul.f32 1.442695, %v837_v49  ;;  %v2171_v55 = vadd.f32 %v815_v53, %v199_v47 }
 0x136   :  { %1945 = vpow2.f32 %v851_v51  ;;  %v840_v56 = vmin.f32 %v2169_v52, 0.0  ;;  %vm832_vm8 = vcmp.gt.f32.partialorder %v2169_v52, 0.0 }
 0x137   :  { %1947 = vpow2.f32 %v849_v54  ;;  %v839_v57 = vmin.f32 %v2171_v55, 0.0  ;;  %vm831_vm9 = vcmp.gt.f32.partialorder %v2171_v55, 0.0 }
 0x138   :  { %v1938_v58 = vpop.eup %1937  ;;  %v855_v59 = vmul.f32 1.442695, %v840_v56 }
 0x139   :  { %v1940_v60 = vpop.eup %1939  ;;  %v1445_v61 = vadd.f32 -1.0, %v1938_v58  ;;  %v853_v62 = vmul.f32 1.442695, %v839_v57 }
 0x13a   :  { %v1444_v0 = vadd.f32 -1.0, %v1940_v60  ;;  %1949 = vpow2.f32 %v855_v59 }
 0x13b   :  { %v866_v1 = vsel %vm826_vm2, %v1874_v23, %v1445_v61  ;;  %1951 = vpow2.f32 %v853_v62 }
 0x13c   :  { %v1942_v2 = vpop.eup %1941  ;;  %v888_v3 = vand.u32 4294901760, %v866_v1  ;;  %v865_v4 = vsel %vm825_vm3, %v1876_v26, %v1444_v0 }
 0x13d   :  { %v1944_v6 = vpop.eup %1943  ;;  %v885_v7 = vand.u32 4294901760, %v865_v4  ;;  %v1447_v8 = vadd.f32 -1.0, %v1942_v2 }
 0x13e   :  { %v2183_v11 = vsub.f32 %v866_v1, %v888_v3  ;;  %v1446_v12 = vadd.f32 -1.0, %v1944_v6 }
 0x13f   :  { %v969_v13 = vsub.f32 %v865_v4, %v885_v7  ;;  %v868_v14 = vsel %vm828_vm4, %v1878_v32, %v1447_v8  ;;  %v2188_v15 = vpack.c.bf16 %v888_v3, %v885_v7 }
 0x140   :  { %v1946_v16 = vpop.eup %1945  ;;  %v977_v17 = vand.u32 4294901760, %v2183_v11  ;;  %v894_v18 = vand.u32 4294901760, %v868_v14  ;;  %v867_v19 = vsel %vm827_vm5, %v1880_v36, %v1446_v12 }
 0x141   :  { %v1948_v20 = vpop.eup %1947  ;;  %v970_v21 = vand.u32 4294901760, %v969_v13  ;;  %v891_v22 = vand.u32 4294901760, %v867_v19  ;;  %v1449_v23 = vadd.f32 -1.0, %v1946_v16  ;;  %1803 = vmatpush3.bf16.xpose.msra.mxu0 %v2188_v15  ;;  %v1826_v24 = vpack.c.bf16 %v2183_v11, %v969_v13 }
 0x142   :  { %v990_v25 = vsub.f32 %v868_v14, %v894_v18  ;;  %v1448_v26 = vadd.f32 -1.0, %v1948_v20  ;;  %1804 = vmatprep.subr.bf16.mxu0 %v1979_v9  ;;  %v978_v27 = vsub.f32 %v2183_v11, %v977_v17 }
 0x143   :  { %v983_v29 = vsub.f32 %v867_v19, %v891_v22  ;;  %v870_v30 = vsel %vm830_vm6, %v2163_v42, %v1449_v23  ;;  %1827 = vmatpush3.bf16.xpose.msra.mxu1 %v1826_v24  ;;  %v2199_v31 = vpack.c.bf16 %v894_v18, %v891_v22  ;;  %v971_v32 = vsub.f32 %v969_v13, %v970_v21 }
 0x144   :  { %v1950_v33 = vpop.eup %1949  ;;  %v991_v34 = vand.u32 4294901760, %v990_v25  ;;  %v900_v35 = vand.u32 4294901760, %v870_v30  ;;  %v869_v36 = vsel %vm829_vm7, %v2165_v46, %v1448_v26  ;;  %1828 = vmatprep.subr.bf16.mxu1 %v1979_v9  ;;  %v979_v37 = vand.u32 4294901760, %v978_v27 }
 0x145   :  { %v1952_v39 = vpop.eup %1951  ;;  %v984_v40 = vand.u32 4294901760, %v983_v29  ;;  %v897_v41 = vand.u32 4294901760, %v869_v36  ;;  %v1451_v42 = vadd.f32 -1.0, %v1950_v33  ;;  %v1829_v43 = vpack.c.bf16 %v990_v25, %v983_v29 }
 0x146   :  { %v1004_v44 = vsub.f32 %v870_v30, %v900_v35  ;;  %v1450_v45 = vadd.f32 -1.0, %v1952_v39  ;;  %v972_v47 = vand.u32 4294901760, %v971_v32  ;;  %v992_v48 = vsub.f32 %v990_v25, %v991_v34 }
 0x147   :  { %v997_v49 = vsub.f32 %v869_v36, %v897_v41  ;;  %v872_v46 = vsel %vm832_vm8, %v2169_v52, %v1451_v42  ;;  %v2208_v50 = vpack.c.bf16 %v900_v35, %v897_v41  ;;  %v985_v51 = vsub.f32 %v983_v29, %v984_v40 }
 0x148   :  { %v1005_v53 = vand.u32 4294901760, %v1004_v44  ;;  %v906_v54 = vand.u32 4294901760, %v872_v46  ;;  %v871_v56 = vsel %vm831_vm9, %v2171_v55, %v1450_v45  ;;  %v1814_v57 = vpack.c.bf16 %v979_v37, %v972_v47 }
 0x149   :  { %v998_v58 = vand.u32 4294901760, %v997_v49  ;;  %v903_v59 = vand.u32 4294901760, %v871_v56  ;;  %1806 = vmatpush3.bf16.xpose.msra.mxu0 %v2199_v31  ;;  %v1832_v60 = vpack.c.bf16 %v1004_v44, %v997_v49  ;;  %v986_v61 = vand.u32 4294901760, %v985_v51 }
 0x14a   :  { %v1018_v62 = vsub.f32 %v872_v46, %v906_v54  ;;  %1807 = vmatprep.subr.bf16.mxu0 %v1979_v9  ;;  %v993_v52 = vand.u32 4294901760, %v992_v48  ;;  %v1006_v0 = vsub.f32 %v1004_v44, %v1005_v53  ;;  %v1850_v1 = vpack.c.bf16 %v977_v17, %v970_v21 }
 0x14b   :  { %v1011_v2 = vsub.f32 %v871_v56, %v903_v59  ;;  %1830 = vmatpush3.bf16.xpose.msra.mxu1 %v1829_v43  ;;  %v2215_v3 = vpack.c.bf16 %v906_v54, %v903_v59  ;;  %v999_v4 = vsub.f32 %v997_v49, %v998_v58  ;;  %v1853_v6 = vpack.c.bf16 %v991_v34, %v984_v40 }
 0x14c   :  { %v1019_v55 = vand.u32 4294901760, %v1018_v62  ;;  %1831 = vmatprep.subr.bf16.mxu1 %v1979_v9  ;;  %v1817_v7 = vpack.c.bf16 %v993_v52, %v986_v61  ;;  %v1007_v8 = vand.u32 4294901760, %v1006_v0  ;;  %v1856_v11 = vpack.c.bf16 %v1005_v53, %v998_v58 }
 0x14d   :  { %v1012_v12 = vand.u32 4294901760, %v1011_v2  ;;  %v1835_v13 = vpack.c.bf16 %v1018_v62, %v1011_v2  ;;  %v1000_v14 = vand.u32 4294901760, %v999_v4  ;;  %v958_v17 = vsub.f32 %v2178_v63, %v2181_v5 }
 0x14e   :  { %v1020_v16 = vsub.f32 %v1018_v62, %v1019_v55 }
 0x14f   :  { %v1820_v18 = vpack.c.bf16 %v1007_v8, %v1000_v14  ;;  %v1013_v19 = vsub.f32 %v1011_v2, %v1012_v12  ;;  %v1859_v20 = vpack.c.bf16 %v1019_v55, %v1012_v12  ;;  %v959_v24 = vand.u32 4294901760, %v958_v17 }
 0x150   :  { %v1021_v21 = vand.u32 4294901760, %v1020_v16 }
 0x151   :  { %1809 = vmatpush3.bf16.xpose.msra.mxu0 %v2208_v50  ;;  %v1014_v22 = vand.u32 4294901760, %v1013_v19  ;;  %v960_v25 = vsub.f32 %v958_v17, %v959_v24 }
 0x152   :  { %1810 = vmatprep.subr.bf16.mxu0 %v1979_v9 }
 0x153   :  { %1833 = vmatpush3.bf16.xpose.msra.mxu1 %v1832_v60  ;;  %v1823_v23 = vpack.c.bf16 %v1021_v21, %v1014_v22  ;;  %v961_v26 = vand.u32 4294901760, %v960_v25 }
 0x154   :  { %1834 = vmatprep.subr.bf16.mxu1 %v1979_v9 }
 0x159   :  { %1812 = vmatpush3.bf16.xpose.msra.mxu0 %v2215_v3 }
 0x15a   :  { %1813 = vmatprep.subr.bf16.mxu0 %v1979_v9 }
 0x15b   :  { %1836 = vmatpush3.bf16.xpose.msra.mxu1 %v1835_v13 }
 0x15c   :  { %1837 = vmatprep.subr.bf16.mxu1 %v1979_v9 }
 0x160   :  { %1680 = vmatmul.mubr.f32.vlgmr.msra.gmra.mrb[8].mxu0 %v961_v26 }
 0x161   :  { %1815 = vmatpush3.bf16.xpose.msra.mxu0 %v1814_v57  ;;  %1698 = vmatprep.mubr.msk.f32.mxu0 %vm1980_vm1, %v1981_v10 }
 0x162   :  { %1718 = vmatmul.mubr.f32.vlgmr.msra.gmra.mrb[8].mxu1 %v958_v17  ;;  %1816 = vmatprep.subr.bf16.mxu0 %v1979_v9 }
 0x163   :  { %1839 = vmatpush3.bf16.xpose.msra.mxu1 %v2188_v15  ;;  %1736 = vmatprep.mubr.msk.f32.mxu1 %vm1980_vm1, %v1981_v10 }
 0x164   :  { %1840 = vmatprep.subr.bf16.mxu1 %v1979_v9 }
 0x169   :  { %1818 = vmatpush3.bf16.xpose.msra.mxu0 %v1817_v7 }
 0x16a   :  { %1819 = vmatprep.subr.bf16.mxu0 %v1979_v9 }
 0x16b   :  { %1842 = vmatpush3.bf16.xpose.msra.mxu1 %v2199_v31 }
 0x16c   :  { %1843 = vmatprep.subr.bf16.mxu1 %v1979_v9 }
 0x171   :  { %1821 = vmatpush3.bf16.xpose.msra.mxu0 %v1820_v18 }
 0x172   :  { %1822 = vmatprep.subr.bf16.mxu0 %v1979_v9 }
 0x173   :  { %1845 = vmatpush3.bf16.xpose.msra.mxu1 %v2208_v50 }
 0x174   :  { %1846 = vmatprep.subr.bf16.mxu1 %v1979_v9 }
 0x179   :  { %1824 = vmatpush3.bf16.xpose.msra.mxu0 %v1823_v23 }
 0x17b   :  { %1848 = vmatpush3.bf16.xpose.msra.mxu1 %v2215_v3 }
 0x17c   :  { %1849 = vmatprep.subr.bf16.mxu1 %v1979_v9 }
 0x180   :  { %1699 = vmatmul.mubr.f32.vlgmr.msra.gmra.mrb[8].mxu0 %v2181_v5 }
 0x182   :  { %1737 = vmatmul.mubr.f32.vlgmr.msra.gmra.mrb[8].mxu1 %v959_v24 }
 0x183   :  { %1851 = vmatpush3.bf16.xpose.msra.mxu1 %v1850_v1  ;;  %1755 = vmatprep.mubr.msk.f32.mxu1 %vm1980_vm1, %v1981_v10 }
 0x184   :  { %1852 = vmatprep.subr.bf16.mxu1 %v1979_v9 }
 0x18b   :  { %1854 = vmatpush3.bf16.xpose.msra.mxu1 %v1853_v6 }
 0x18c   :  { %1855 = vmatprep.subr.bf16.mxu1 %v1979_v9 }
 0x193   :  { %1857 = vmatpush3.bf16.xpose.msra.mxu1 %v1856_v11 }
 0x194   :  { %1858 = vmatprep.subr.bf16.mxu1 %v1979_v9 }
 0x19b   :  { %1860 = vmatpush3.bf16.xpose.msra.mxu1 %v1859_v20 }
 0x19c   :  { %1861 = vmatprep.subr.bf16.mxu1 %v1979_v9 }
 0x1a2   :  { %1756 = vmatmul.mubr.f32.vlgmr.msra.gmra.mrb[8].mxu1 %v2181_v5 }
 0x1a3   :  { %1863 = vmatpush3.bf16.xpose.msra.mxu1 %v2188_v15  ;;  %1774 = vmatprep.mubr.msk.f32.mxu1 %vm1980_vm1, %v1981_v10  ;;  %v880_v15 = vlaneseq }
 0x1a4   :  { %1864 = vmatprep.subr.bf16.mxu1 %v1979_v9 }
 0x1a5   :  { %v881_v28 = vshrl.u32 %v880_v15, 7 }
 0x1a7   :  { %v882_v29 = vsub.s32 0, %v881_v28 }
 0x1ab   :  { %1866 = vmatpush3.bf16.xpose.msra.mxu1 %v2199_v31 }
 0x1ac   :  { %1867 = vmatprep.subr.bf16.mxu1 %v1979_v9 }
 0x1b1   :  { %v878_v10 = vpop.permute.xlu0 %877 }
 0x1b2   :  { %v883_v30 = vrot.slane %v878_v10, %v882_v29 }
 0x1b3   :  { %1869 = vmatpush3.bf16.xpose.msra.mxu1 %v2208_v50 }
 0x1b4   :  { %1870 = vmatprep.subr.bf16.mxu1 %v1979_v9 }
 0x1bb   :  { %1872 = vmatpush3.bf16.xpose.msra.mxu1 %v2215_v3 }
 0x1c2   :  { %1775 = vmatmul.mubr.f32.vlgmr.msra.gmra.mrb[8].mxu1 %v2181_v5 }
 0x253   :  { %v1074_v63 = vpop.f32.mrb[8].mxu0 }
 0x254   :  { %v1700_v27 = vpop.f32.mrb[9].mxu0  ;;  %v1889_v32 = vadd.f32 %v1074_v63, %v883_v30 }
 0x295   :  { %v1417_v33 = vpop.f32.mrb[8].mxu1 }
 0x296   :  { %v1890_v31 = vadd.f32 %v1889_v32, %v1417_v33  ;;  %v1776_v34 = vpop.f32.mrb[9].mxu1 }
 0x298   :  { %v1422_v35 = vmin.f32 %v1890_v31, 0.0  ;;  %vm1421_vm11 = vcmp.gt.f32.partialorder %v1890_v31, 0.0 }
 0x29a   :  { %v1423_v36 = vmul.f32 1.442695, %v1422_v35 }
 0x29c   :  { %1953 = vpow2.f32 %v1423_v36 }
 0x2a6   :  { %v1954_v9 = vpop.eup %1953 }
 0x2a7   :  { %v1452_v37 = vadd.f32 -1.0, %v1954_v9 }
 0x2a9   :  { %v1426_v5 = vsel %vm1421_vm11, %v1890_v31, %v1452_v37 }
 0x2aa   :  { %1428 = vst.msk [vmem:[#allocation3] sm:$0x1] %vm1427_vm10, %v1426_v5 }
 0x2ab   :  { %1966 = shalt.err (!%p1963_p4)
}
 0x2ac   :  { %s1967_s20 = scalar_lea.hbm %s2276_s5, 16 }
 0x2ad   :  { %p1968_p5 = scmp.ne.s32.totalorder %s2276_s5, %s1967_s20  ;;  %p1971_p6 = scmp.lt.u32.totalorder %s1967_s20, %s2276_s5 }
 0x2af   :  { %p1973_p7 = pnand %p1971_p6, %p1968_p5 }
 0x2b1   :  { %1976 = shalt.err (!%p1973_p7)
}
 0x2b2   :  { %1438 = dma.vmem_to_hbm [thread:$0]  %s1436_s15, 16, %s2276_s5, [#allocation4]  }
 0x2b3   :  { %1977 = dma.done.wait [#allocation4], 16  }
 0x2b4   :  { %1978 = vsyncadd [#allocation4], 4294967280 }
 0x2b5   :  { %1442 = vsyncpa [#allocation4], 1 }

</bundles_post_ra>
